<compile_context>
chip_gen: v7x
topology: tpu7x:2x2x1
jax: 0.10.0
libtpu: 0.0.40
codegen_flags: <defaults>
</compile_context>

<pallas_src>
import jax
import jax.numpy as jnp
from jax.experimental import pallas as pl
from jax.experimental.pallas import tpu as pltpu


def _ae_kernel(x_ref, w1_ref, b1_ref, w23_ref, b23_ref, w4_ref, b4_ref, out_ref):
    """Fused MLP, (features, rows) layout:
       y = W4 @ relu(W23 @ relu(W1 @ x + b1) + b23) + b4
    """
    x = x_ref[...]                                            # (D_in, rt), compute dtype

    h = jnp.dot(w1_ref[...], x,
                preferred_element_type=jnp.float32) + b1_ref[...]   # (H, rt) f32
    h = jnp.maximum(h, 0.0)                                   # bias/ReLU in f32 (VPU)

    d = jnp.dot(w23_ref[...], h.astype(w23_ref.dtype),
                preferred_element_type=jnp.float32) + b23_ref[...]  # (H, rt) f32
    d = jnp.maximum(d, 0.0)

    y = jnp.dot(w4_ref[...], d.astype(w4_ref.dtype),
                preferred_element_type=jnp.float32) + b4_ref[...]   # (D_in, rt) f32

    out_ref[...] = y.astype(out_ref.dtype)


def point_cloud_autoencoder(x, params, *, row_tile=1024, use_bf16=True):
    """x: (B, N, input_dim) float32.  params: PyTorch-layout (w=(out,in), b=(out,))."""
    B, N, D = x.shape
    rows = B * N
    cdt = jnp.bfloat16 if use_bf16 else jnp.float32

    w1, b1 = params["w1"], params["b1"]        # (H, D), (H,)
    w2, b2 = params["w2"], params["b2"]        # (L, H), (L,)
    w3, b3 = params["w3"], params["b3"]        # (H, L), (H,)
    w4, b4 = params["w4"], params["b4"]        # (D, H), (D,)
    H = w1.shape[0]

    # Fuse the two adjacent Linear layers (no nonlinearity in between) in f32.
    w23 = w3.astype(jnp.float32) @ w2.astype(jnp.float32)                # (H, H)
    b23 = w3.astype(jnp.float32) @ b2.astype(jnp.float32) + b3           # (H,)

    # Weights in compute dtype; biases stay f32 as (out, 1) columns
    # (broadcast along the lane/rows axis inside the kernel).
    w1c, w23c, w4c = w1.astype(cdt), w23.astype(cdt), w4.astype(cdt)
    b1c = b1.astype(jnp.float32).reshape(H, 1)
    b23c = b23.astype(jnp.float32).reshape(H, 1)
    b4c = b4.astype(jnp.float32).reshape(D, 1)

    # Lane-dense layout: features on sublanes, B*N rows on lanes.
    xt = x.reshape(rows, D).T.astype(cdt)      # (D, rows)

    # Row tile: multiple of 128 (lane width), clamped so tiny inputs still work.
    if rows >= 128:
        rt = max(128, (int(row_tile) // 128) * 128)
        rt = min(rt, ((rows + 127) // 128) * 128)
    else:
        rt = rows                               # block == full dim (allowed)
    grid = (pl.cdiv(rows, rt),)
    # NOTE(v7x): for large point clouds grid length stays >= 2 so "parallel"
    # can shard grid steps across both TensorCores.

    whole = lambda i: (0, 0)                    # weights/biases: same block every step

    out_t = pl.pallas_call(
        _ae_kernel,
        out_shape=jax.ShapeDtypeStruct((D, rows), x.dtype),
        grid_spec=pltpu.PrefetchScalarGridSpec(
            num_scalar_prefetch=0,
            grid=grid,
            in_specs=[
                pl.BlockSpec((D, rt), lambda i: (0, i)),   # x columns (rows on lanes)
                pl.BlockSpec(w1c.shape, whole),
                pl.BlockSpec(b1c.shape, whole),
                pl.BlockSpec(w23c.shape, whole),
                pl.BlockSpec(b23c.shape, whole),
                pl.BlockSpec(w4c.shape, whole),
                pl.BlockSpec(b4c.shape, whole),
            ],
            out_specs=pl.BlockSpec((D, rt), lambda i: (0, i)),
        ),
        compiler_params=pltpu.CompilerParams(
            dimension_semantics=("parallel",)),
    )(xt, w1c, b1c, w23c, b23c, w4c, b4c)

    # Back to the module's (B, N, input_dim) layout.
    return out_t.T.reshape(B, N, D)


def init_params(key, input_dim, hidden_dim, latent_dim):
    """PyTorch-style init and layout: weight (out, in), bias (out,)."""
    ks = jax.random.split(key, 8)

    def lin(kw, kb, fan_in, fan_out):
        bound = 1.0 / jnp.sqrt(float(fan_in))
        w = jax.random.uniform(kw, (fan_out, fan_in), jnp.float32, -bound, bound)
        b = jax.random.uniform(kb, (fan_out,), jnp.float32, -bound, bound)
        return w, b

    w1, b1 = lin(ks[0], ks[1], input_dim, hidden_dim)
    w2, b2 = lin(ks[2], ks[3], hidden_dim, latent_dim)
    w3, b3 = lin(ks[4], ks[5], latent_dim, hidden_dim)
    w4, b4 = lin(ks[6], ks[7], hidden_dim, input_dim)
    return dict(w1=w1, b1=b1, w2=w2, b2=b2, w3=w3, b3=b3, w4=w4, b4=b4)


def reference_forward(x, p):
    """Plain-JAX reference mirroring the PyTorch forward exactly (unfused, f32)."""
    h = jnp.maximum(x @ p["w1"].T + p["b1"], 0.0)
    z = h @ p["w2"].T + p["b2"]
    d = jnp.maximum(z @ p["w3"].T + p["b3"], 0.0)
    return d @ p["w4"].T + p["b4"]


if __name__ == "__main__":
    key = jax.random.PRNGKey(0)
    k_x, k_p = jax.random.split(key)

    B, N = 2, 64                        # 2 point clouds, 64 points each (rows = 128)
    input_dim, hidden_dim, latent_dim = 16, 32, 8

    x = jax.random.normal(k_x, (B, N, input_dim), jnp.float32)
    params = init_params(k_p, input_dim, hidden_dim, latent_dim)

    ref = reference_forward(x, params)

    # Default path: bf16 MXU operands, f32 accumulation (loose tolerance).
    out = jax.block_until_ready(point_cloud_autoencoder(x, params))
    assert out.shape == (B, N, input_dim)
    assert jnp.allclose(out, ref, atol=5e-2, rtol=5e-2), "bf16 kernel mismatch vs reference"

    # f32 path: exact up to W2@W3 fusion reassociation (tight tolerance).
    out_f32 = jax.block_until_ready(point_cloud_autoencoder(x, params, use_bf16=False))
    assert jnp.allclose(out_f32, ref, atol=1e-4, rtol=1e-4), "f32 kernel mismatch vs reference"

    print("KERNEL_OK")
</pallas_src>

<mosaic_0001>
module attributes {stable_mosaic.version = 11 : i64} {
  func.func @_ae_kernel(%arg0: i32, %arg1: memref<16x128xbf16, #tpu.memory_space<vmem>>, %arg2: memref<32x16xbf16, #tpu.memory_space<vmem>>, %arg3: memref<32x1xf32, #tpu.memory_space<vmem>>, %arg4: memref<32x32xbf16, #tpu.memory_space<vmem>>, %arg5: memref<32x1xf32, #tpu.memory_space<vmem>>, %arg6: memref<16x32xbf16, #tpu.memory_space<vmem>>, %arg7: memref<16x1xf32, #tpu.memory_space<vmem>>, %arg8: memref<16x128xf32, #tpu.memory_space<vmem>>) attributes {dimension_semantics = [#tpu.dimension_semantics<parallel>], iteration_bounds = array<i64: 1>, scalar_prefetch = 0 : i64, scratch_operands = 0 : i64, tpu.core_type = #tpu.core_type<tc>, window_params = [{transform_indices = @transform_0, window_bounds = array<i64: 16, 128>}, {pipeline_mode = #tpu.pipeline_mode<synchronous>, transform_indices = @transform_1, window_bounds = array<i64: 32, 16>}, {pipeline_mode = #tpu.pipeline_mode<synchronous>, transform_indices = @transform_2, window_bounds = array<i64: 32, 1>}, {pipeline_mode = #tpu.pipeline_mode<synchronous>, transform_indices = @transform_3, window_bounds = array<i64: 32, 32>}, {pipeline_mode = #tpu.pipeline_mode<synchronous>, transform_indices = @transform_4, window_bounds = array<i64: 32, 1>}, {pipeline_mode = #tpu.pipeline_mode<synchronous>, transform_indices = @transform_5, window_bounds = array<i64: 16, 32>}, {pipeline_mode = #tpu.pipeline_mode<synchronous>, transform_indices = @transform_6, window_bounds = array<i64: 16, 1>}, {transform_indices = @transform_7, window_bounds = array<i64: 16, 128>}]} {
    %c0 = arith.constant 0 : index
    %c0_0 = arith.constant 0 : index
    %0 = vector.load %arg1[%c0, %c0_0] : memref<16x128xbf16, #tpu.memory_space<vmem>>, vector<16x128xbf16>
    %c0_1 = arith.constant 0 : index
    %c0_2 = arith.constant 0 : index
    %1 = vector.load %arg2[%c0_1, %c0_2] : memref<32x16xbf16, #tpu.memory_space<vmem>>, vector<32x16xbf16>
    %cst = arith.constant dense<0.000000e+00> : vector<32x128xf32>
    %2 = tpu.matmul %1, %0, %cst {dimension_numbers = #tpu.dot_dimension_numbers<[1], [0], [0], [1], [0, 0, 1, 1], [], []>} : vector<32x16xbf16>, vector<16x128xbf16>, vector<32x128xf32> -> vector<32x128xf32>
    %c0_3 = arith.constant 0 : index
    %c0_4 = arith.constant 0 : index
    %3 = vector.load %arg3[%c0_3, %c0_4] : memref<32x1xf32, #tpu.memory_space<vmem>>, vector<32x1xf32>
    %4 = vector.broadcast %3 : vector<32x1xf32> to vector<32x128xf32>
    %5 = arith.addf %2, %4 : vector<32x128xf32>
    %cst_5 = arith.constant 0.000000e+00 : f32
    %6 = vector.broadcast %cst_5 : f32 to vector<32x128xf32>
    %7 = arith.maximumf %5, %6 : vector<32x128xf32>
    %c0_6 = arith.constant 0 : index
    %c0_7 = arith.constant 0 : index
    %8 = vector.load %arg4[%c0_6, %c0_7] : memref<32x32xbf16, #tpu.memory_space<vmem>>, vector<32x32xbf16>
    %9 = arith.truncf %7 : vector<32x128xf32> to vector<32x128xbf16>
    %cst_8 = arith.constant dense<0.000000e+00> : vector<32x128xf32>
    %10 = tpu.matmul %8, %9, %cst_8 {dimension_numbers = #tpu.dot_dimension_numbers<[1], [0], [0], [1], [0, 0, 1, 1], [], []>} : vector<32x32xbf16>, vector<32x128xbf16>, vector<32x128xf32> -> vector<32x128xf32>
    %c0_9 = arith.constant 0 : index
    %c0_10 = arith.constant 0 : index
    %11 = vector.load %arg5[%c0_9, %c0_10] : memref<32x1xf32, #tpu.memory_space<vmem>>, vector<32x1xf32>
    %12 = vector.broadcast %11 : vector<32x1xf32> to vector<32x128xf32>
    %13 = arith.addf %10, %12 : vector<32x128xf32>
    %cst_11 = arith.constant 0.000000e+00 : f32
    %14 = vector.broadcast %cst_11 : f32 to vector<32x128xf32>
    %15 = arith.maximumf %13, %14 : vector<32x128xf32>
    %c0_12 = arith.constant 0 : index
    %c0_13 = arith.constant 0 : index
    %16 = vector.load %arg6[%c0_12, %c0_13] : memref<16x32xbf16, #tpu.memory_space<vmem>>, vector<16x32xbf16>
    %17 = arith.truncf %15 : vector<32x128xf32> to vector<32x128xbf16>
    %cst_14 = arith.constant dense<0.000000e+00> : vector<16x128xf32>
    %18 = tpu.matmul %16, %17, %cst_14 {dimension_numbers = #tpu.dot_dimension_numbers<[1], [0], [0], [1], [0, 0, 1, 1], [], []>} : vector<16x32xbf16>, vector<32x128xbf16>, vector<16x128xf32> -> vector<16x128xf32>
    %c0_15 = arith.constant 0 : index
    %c0_16 = arith.constant 0 : index
    %19 = vector.load %arg7[%c0_15, %c0_16] : memref<16x1xf32, #tpu.memory_space<vmem>>, vector<16x1xf32>
    %20 = vector.broadcast %19 : vector<16x1xf32> to vector<16x128xf32>
    %21 = arith.addf %18, %20 : vector<16x128xf32>
    %c0_17 = arith.constant 0 : index
    %c0_18 = arith.constant 0 : index
    %22 = vector.load %arg8[%c0_17, %c0_18] : memref<16x128xf32, #tpu.memory_space<vmem>>, vector<16x128xf32>
    tpu.vector_store %arg8[%c0_17, %c0_18], %21 {strides = array<i32>} : memref<16x128xf32, #tpu.memory_space<vmem>>, vector<16x128xf32>,
    return
  }
  func.func @transform_0(%arg0: i32) -> (i32, i32) {
    %c0_i32 = arith.constant 0 : i32
    %c0_i32_0 = arith.constant 0 : i32
    return %c0_i32, %arg0 : i32, i32
  }
  func.func @transform_1(%arg0: i32) -> (i32, i32) {
    %c0_i32 = arith.constant 0 : i32
    %c0_i32_0 = arith.constant 0 : i32
    %c0_i32_1 = arith.constant 0 : i32
    return %c0_i32, %c0_i32_0 : i32, i32
  }
  func.func @transform_2(%arg0: i32) -> (i32, i32) {
    %c0_i32 = arith.constant 0 : i32
    %c0_i32_0 = arith.constant 0 : i32
    %c0_i32_1 = arith.constant 0 : i32
    return %c0_i32, %c0_i32_0 : i32, i32
  }
  func.func @transform_3(%arg0: i32) -> (i32, i32) {
    %c0_i32 = arith.constant 0 : i32
    %c0_i32_0 = arith.constant 0 : i32
    %c0_i32_1 = arith.constant 0 : i32
    return %c0_i32, %c0_i32_0 : i32, i32
  }
  func.func @transform_4(%arg0: i32) -> (i32, i32) {
    %c0_i32 = arith.constant 0 : i32
    %c0_i32_0 = arith.constant 0 : i32
    %c0_i32_1 = arith.constant 0 : i32
    return %c0_i32, %c0_i32_0 : i32, i32
  }
  func.func @transform_5(%arg0: i32) -> (i32, i32) {
    %c0_i32 = arith.constant 0 : i32
    %c0_i32_0 = arith.constant 0 : i32
    %c0_i32_1 = arith.constant 0 : i32
    return %c0_i32, %c0_i32_0 : i32, i32
  }
  func.func @transform_6(%arg0: i32) -> (i32, i32) {
    %c0_i32 = arith.constant 0 : i32
    %c0_i32_0 = arith.constant 0 : i32
    %c0_i32_1 = arith.constant 0 : i32
    return %c0_i32, %c0_i32_0 : i32, i32
  }
  func.func @transform_7(%arg0: i32) -> (i32, i32) {
    %c0_i32 = arith.constant 0 : i32
    %c0_i32_0 = arith.constant 0 : i32
    return %c0_i32, %arg0 : i32, i32
  }
}

</mosaic_0001>

<bundles_post_ra>
// kernel: tpu_custom_call.1
= control target key start
LH: loop header
LB: loop body
LE: loop exit
PB: predicated region body
PF: predicated region fallthrough
CT: control target
= control target key end

     0   :  { %vm74_vm0 = vcmask 130048   ;;  %v398_v3 = vmov 0   ;;  %s507_s0 = inlined_call_operand.vmem [shape: bf16[16,128], index: 0, kind: input, shape index: {}]   ;;  %s508_s1 = inlined_call_operand.vmem [shape: bf16[32,16], index: 1, kind: input, shape index: {}]   ;;  %s509_s2 = inlined_call_operand.vmem [shape: f32[32,1], index: 2, kind: input, shape index: {}]   ;;  %s510_s3 = inlined_call_operand.vmem [shape: bf16[32,32], index: 3, kind: input, shape index: {}]   ;;  %s511_s4 = inlined_call_operand.vmem [shape: f32[32,1], index: 4, kind: input, shape index: {}]   ;;  %s512_s5 = inlined_call_operand.vmem [shape: bf16[16,32], index: 5, kind: input, shape index: {}]   ;;  %s513_s6 = inlined_call_operand.vmem [shape: f32[16,1], index: 6, kind: input, shape index: {}]   ;;  %s514_s7 = inlined_call_operand.hbm [shape: f32[16,128], index: 7, kind: output, shape index: {}]  }
   0x1   :  { %v368_v0 = vld [vmem:[%s507_s0] sm:$0xff]   ;;  %v370_v2 = vld [vmem:[%s508_s1 + $0x8] sm:$0xff]   ;;  %366 = vset.pattern.permute.xlu0 %v398_v3  ;;  %v36_v5 = vld [vmem:[%s509_s2 + $0x10] sm:$0xff]  ;;  %367 = vset.pattern.permute.xlu1 %v398_v3 }
   0x2   :  { %v369_v1 = vld [vmem:[%s508_s1] sm:$0xff]   ;;  %338 = vmatprep.subr.bf16.mxu0 %v368_v0  ;;  %50 = vperm.xlu1 %367, %v36_v5   ;;  %v35_v6 = vld [vmem:[%s509_s2 + $0x8] sm:$0xff]  ;;  %v37_v7 = vld [vmem:[%s509_s2 + $0x18] sm:$0xff] }
   0x3   :  { %339 = vmatpush3.bf16.msra.mxu0 %v368_v0  ;;  %340 = vmatprep.mubr.msk.bf16.mxu0 %vm74_vm0, %v369_v1  ;;  %v34_v4 = vld [vmem:[%s509_s2] sm:$0xff] }
   0x4   :  { %40 = vperm.xlu0 %366, %v34_v4  }
   0x6   :  { %341 = vmatmul.mubr.msk.bf16.vlgmr.msra.gmra.mrb[0].mxu0 %vm74_vm0, %v370_v2 }
   0x8   :  { %45 = vperm.xlu0 %366, %v35_v6  }
   0x9   :  { %12 = vsyncpa [#allocation3], 0  ;;  %55 = vperm.xlu1 %367, %v37_v7   ;;  %v140_v8 = vld [vmem:[%s511_s4] sm:$0xff]  ;;  %v141_v9 = vld [vmem:[%s511_s4 + $0x8] sm:$0xff]  ;;  %vm174_vm1 = vcmask 261120   ;;  %v399_v34 = vmov 0.0  }
   0xa   :  { %v142_v10 = vld [vmem:[%s511_s4 + $0x10] sm:$0xff]  ;;  %v143_v11 = vld [vmem:[%s511_s4 + $0x18] sm:$0xff]  ;;  %v238_v12 = vld [vmem:[%s513_s6] sm:$0xff]  ;;  %352 = vmatprep.subr.bf16.mxu0 %v399_v34  ;;  %vm400_vm2 = vmmov 0   ;;  %s401_s27 = smov [#allocation2]  }
   0xb   :  { %v239_v13 = vld [vmem:[%s513_s6 + $0x8] sm:$0xff]  ;;  %v371_v14 = vld [vmem:[%s510_s3] sm:$0xff]   ;;  %356 = vmatprep.mubr.msk.bf16.mxu0 %vm400_vm2, %v399_v34  ;;  %s306_s28 = sshll.u32 %s401_s27, 4  ;;  %s307_s28 = int_to_ptr.vmem [resolvable:$true] %s306_s28 }
   0xc   :  { %146 = vperm.xlu0 %366, %v140_v8   ;;  %348 = vmatprep.mubr.msk.bf16.mxu1 %vm174_vm1, %v371_v14  ;;  %v372_v33 = vld [vmem:[%s510_s3 + $0x8] sm:$0xff]   ;;  %v373_v53 = vld [vmem:[%s512_s5] sm:$0xff]   ;;  %s374_s29 = scalar_lea.vmem %s307_s28, 256  ;;  %p379_p1 = scmp.lt.s32.totalorder %s307_s28, %s307_s28 }
   0xd   :  { %151 = vperm.xlu1 %367, %v141_v9   ;;  %p375_p0 = scmp.ne.s32.totalorder %s307_s28, %s374_s29  ;;  %p380_p2 = scmp.lt.s32.totalorder %s374_s29, %s374_s29 }
   0xf   :  { %p381_p3 = por %p380_p2, %p379_p1 }
  0x10   :  { %156 = vperm.xlu0 %366, %v142_v10  }
  0x11   :  { %161 = vperm.xlu1 %367, %v143_v11   ;;  %p382_p4 = pnand %p381_p3, %p375_p0 }
  0x14   :  { %242 = vperm.xlu0 %366, %v238_v12  }
  0x15   :  { %247 = vperm.xlu1 %367, %v239_v13  }
  0x81   :  { %v51_v15 = vpop.permute.xlu1 %50 }
  0x83   :  { %v41_v16 = vpop.permute.xlu0 %40 }
  0x87   :  { %v46_v23 = vpop.permute.xlu0 %45 }
  0x88   :  { %v56_v20 = vpop.permute.xlu1 %55 }
  0x8b   :  { %v147_v35 = vpop.permute.xlu0 %146 }
  0x8c   :  { %v152_v36 = vpop.permute.xlu1 %151 }
  0x8f   :  { %v157_v37 = vpop.permute.xlu0 %156 }
  0x90   :  { %v162_v41 = vpop.permute.xlu1 %161 }
  0x93   :  { %v243_v54 = vpop.permute.xlu0 %242 }
  0x94   :  { %v248_v58 = vpop.permute.xlu1 %247 }
  0xd9   :  { %v342_v17 = vpop.f32.mrb[0].mxu0 }
  0xda   :  { %v124_v18 = vadd.f32 %v342_v17, %v51_v15  ;;  %v115_v19 = vpop.f32.mrb[1].mxu0 }
  0xdb   :  { %v116_v21 = vadd.f32 %v115_v19, %v41_v16  ;;  %v343_v22 = vpop.f32.mrb[2].mxu0 }
  0xdc   :  { %v127_v24 = vadd.f32 %v343_v22, %v56_v20  ;;  %v118_v25 = vpop.f32.mrb[3].mxu0  ;;  %v132_v27 = vmax.f32 %v124_v18, 0.0 }
  0xdd   :  { %v119_v26 = vadd.f32 %v118_v25, %v46_v23  ;;  %v130_v29 = vmax.f32 %v116_v21, 0.0 }
  0xde   :  { %v133_v28 = vmax.f32 %v127_v24, 0.0 }
  0xdf   :  { %v131_v30 = vmax.f32 %v119_v26, 0.0 }
  0xe0   :  { %v139_v31 = vpack.c.bf16 %v133_v28, %v132_v27 }
  0xe1   :  { %v138_v32 = vpack.c.bf16 %v131_v30, %v130_v29 }
  0xe3   :  { %344 = vmatprep.subr.bf16.mxu1 %v138_v32 }
  0xe4   :  { %345 = vmatpush3.bf16.msra.mxu1 %v138_v32 }
  0xe5   :  { %346 = vmatprep.subr.bf16.mxu1 %v139_v31 }
  0xe8   :  { %347 = vmatpush3.bf16.msra.mxu1 %v139_v31 }
  0xeb   :  { %349 = vmatmul.mubr.msk.bf16.vlgmr.msra.gmra.mrb[0].mxu1 %vm174_vm1, %v372_v33 }
 0x1be   :  { %v350_v38 = vpop.f32.mrb[0].mxu1 }
 0x1bf   :  { %v224_v39 = vadd.f32 %v350_v38, %v157_v37  ;;  %v215_v40 = vpop.f32.mrb[1].mxu1 }
 0x1c0   :  { %v216_v42 = vadd.f32 %v215_v40, %v147_v35  ;;  %v351_v43 = vpop.f32.mrb[2].mxu1 }
 0x1c1   :  { %v227_v44 = vadd.f32 %v351_v43, %v162_v41  ;;  %v218_v45 = vpop.f32.mrb[3].mxu1  ;;  %v232_v47 = vmax.f32 %v224_v39, 0.0 }
 0x1c2   :  { %v219_v46 = vadd.f32 %v218_v45, %v152_v36  ;;  %v230_v49 = vmax.f32 %v216_v42, 0.0 }
 0x1c3   :  { %v233_v48 = vmax.f32 %v227_v44, 0.0 }
 0x1c4   :  { %v231_v50 = vmax.f32 %v219_v46, 0.0 }
 0x1c5   :  { %v237_v51 = vpack.c.bf16 %v233_v48, %v232_v47 }
 0x1c6   :  { %v236_v52 = vpack.c.bf16 %v231_v50, %v230_v49 }
 0x1c8   :  { %353 = vmatpush3.bf16.msra.mxu0 %v236_v52 }
 0x1c9   :  { %354 = vmatprep.subr.bf16.mxu0 %v399_v34 }
 0x1cc   :  { %355 = vmatpush3.bf16.msra.mxu0 %v237_v51 }
 0x1cf   :  { %357 = vmatmul.mubr.msk.bf16.vlgmr.msra.gmra.mrb[4].mxu0 %vm174_vm1, %v373_v53 }
 0x2a2   :  { %v292_v55 = vpop.f32.mrb[4].mxu0 }
 0x2a3   :  { %v293_v56 = vadd.f32 %v292_v55, %v243_v54  ;;  %v358_v57 = vpop.f32.mrb[5].mxu0 }
 0x2a4   :  { %v295_v59 = vpop.f32.mrb[6].mxu0 }
 0x2a5   :  { %299 = vst [vmem:[#allocation2] sm:$0xff] %v293_v56  ;;  %v296_v60 = vadd.f32 %v295_v59, %v248_v58  ;;  %v359_v61 = vpop.f32.mrb[7].mxu0 }
 0x2a7   :  { %300 = vst [vmem:[#allocation2 + $0x8] sm:$0xff] %v296_v60 }
 0x2a8   :  { %385 = shalt.err (!%p382_p4)
}
 0x2a9   :  { %s386_s8 = scalar_lea.hbm %s514_s7, 256 }
 0x2aa   :  { %p387_p5 = scmp.ne.s32.totalorder %s514_s7, %s386_s8  ;;  %p390_p6 = scmp.lt.u32.totalorder %s386_s8, %s514_s7 }
 0x2ac   :  { %p392_p7 = pnand %p390_p6, %p387_p5 }
 0x2ae   :  { %395 = shalt.err (!%p392_p7)
}
 0x2af   :  { %s402_s1 = smov 128   ;;  %s403_s12 = smov 8  }
 0x2b0   :  { %312 = dma.vmem_to_hbm [thread:$0]  %s307_s28, 256, %s514_s7, [#allocation3], %s402_s1, %s402_s1, %s403_s12  }
 0x2b1   :  { %396 = dma.done.wait [#allocation3], 256  }
 0x2b2   :  { %397 = vsyncadd [#allocation3], 4294967040 }
 0x2b3   :  { %316 = vsyncpa [#allocation3], 1 }

</bundles_post_ra>
